<compile_context>
chip_gen: v5e
topology: v5e:2x2
jax: 0.10.0
libtpu: 0.0.40
codegen_flags: <defaults>
</compile_context>

<pallas_src>
import math
import numpy as np
import jax
import jax.numpy as jnp
from jax.experimental import pallas as pl
from jax.experimental.pallas import tpu as pltpu


# ---------------------------------------------------------------------------
# Kernel body: o = x * scale (scale is a compile-time Python float).
# ---------------------------------------------------------------------------
def _scale_kernel(scale, x_ref, o_ref):
    xf = x_ref[...].astype(jnp.float32)
    o_ref[...] = (xf * jnp.float32(scale)).astype(o_ref.dtype)


_LANE = 128
_SUBLANE_BY_ITEMSIZE = {4: 8, 2: 16, 1: 32}   # f32 / bf16 / int8-fp8 packing

# Below this size a standalone pallas_call is dominated by launch + pipeline
# fill; XLA's fused scalar multiply is already at the HBM roofline there.
_MIN_PALLAS_BYTES = 4 << 20        # 4 MiB

# Default block size for the mem-bound stream (v5e / v6e).  With 3x-buffered
# input + 2x-buffered output, resident VMEM is ~5x this -> ~10 MiB, under the
# 16 MiB v5e scoped-VMEM default.
_TARGET_BLOCK_BYTES = 2 << 20      # 2 MiB


def _chip_config():
    """Return (target_block_bytes, vmem_limit_bytes, num_tensorcores_per_chip).

    Defaults are safe for every generation; v7x gets bigger blocks (its ~0.35us
    per-step overhead is a larger fraction of a ~1us HBM step at 3.2 TB/s) plus
    an explicit scoped-VMEM limit with headroom under its 64 MiB/TC VMEM, and
    is flagged as 2-TC so the grid is split/balanced across both cores.
    """
    target, vmem_limit, num_tc = _TARGET_BLOCK_BYTES, None, 1
    kind = ""
    try:
        kind = jax.devices()[0].device_kind.lower()
    except Exception:
        pass
    if "v7" in kind:
        target = 4 << 20           # 4 MiB blocks
        vmem_limit = 28 << 20      # 5x block = 20 MiB resident + headroom
        num_tc = 2
    # v5e / v6e: keep 2 MiB blocks, scoped-VMEM defaults already cover it.
    return target, vmem_limit, num_tc


def _pick_lane_width(total):
    """Largest 'nice' lane width (multiple of 128) that divides `total`."""
    for lanes in (4096, 2048, 1024, 512, 256, _LANE):
        if total % lanes == 0:
            return lanes
    return None


def weight_scaling(x, kernel_shape, gain=float(np.sqrt(2.0)),
                   force_pallas=False, donate=False, _block_bytes=None):
    """Pallas equivalent of WeightScaling.forward: input * gain / sqrt(fan_in).

    x:            array of any shape / dtype (NCHW weights, etc.).
    kernel_shape: [k, k, in_channels, out_channels]
    force_pallas: take the Pallas path even for tiny tensors (testing).
    donate:       alias the input HBM buffer to the output.  Only safe when the
                  scaled weight is a transient (NOT the persistent parameter
                  that is reused every step) -- hence opt-in.
    _block_bytes: test-only override of the per-step block size.
    """
    fan_in = float(np.prod(kernel_shape[:-1]))
    scale = float(gain) / math.sqrt(fan_in)

    orig_shape = x.shape
    dtype = x.dtype

    # Non-float inputs: match PyTorch's int_tensor * float_scalar promotion
    # (result is float), instead of truncating back to the integer dtype.
    if not jnp.issubdtype(dtype, jnp.floating):
        return x.astype(jnp.float32) * jnp.float32(scale)

    itemsize = jnp.dtype(dtype).itemsize
    total = int(np.prod(orig_shape)) if orig_shape else 1
    total_bytes = total * itemsize

    # --- tiny-tensor fast path: let XLA fuse the scalar multiply ------------
    if (not force_pallas) and total_bytes < _MIN_PALLAS_BYTES:
        # TODO(synk): fold the scalar scale into the consumer conv/matmul
        # (scale the other operand or the output) so the standalone HBM
        # round trip disappears entirely -- that beats any kernel tuning.
        return (x.astype(jnp.float32) * jnp.float32(scale)).astype(dtype)

    target_block_bytes, vmem_limit, num_tc = _chip_config()
    if _block_bytes is not None:
        target_block_bytes = int(_block_bytes)

    kernel = lambda x_ref, o_ref: _scale_kernel(scale, x_ref, o_ref)
    cost = pl.CostEstimate(flops=total, transcendentals=0,
                           bytes_accessed=2 * total_bytes)
    cparams = pltpu.CompilerParams(dimension_semantics=("parallel",),
                                   vmem_limit_bytes=vmem_limit)
    extra = {}
    if donate:
        extra["input_output_aliases"] = {0: 0}

    flat = x.reshape(-1)
    sublane = _SUBLANE_BY_ITEMSIZE.get(itemsize, 8)
    lanes = _pick_lane_width(total)

    if lanes is not None:
        # --- lane-dense 2-D slab: unmasked full-width vector stores ---------
        rows = total // lanes
        tile_rows = target_block_bytes // (lanes * itemsize)
        tile_rows = max(sublane, (tile_rows // sublane) * sublane)
        tile_rows = min(tile_rows, rows)

        if num_tc >= 2:
            # v7x: give both TensorCores work, and keep the step count even
            # so neither core gets an extra trailing block.
            if tile_rows == rows and rows >= 2 * sublane:
                half = pl.cdiv(rows, 2)
                tile_rows = min(rows, max(sublane,
                                          pl.cdiv(half, sublane) * sublane))
            steps = pl.cdiv(rows, tile_rows)
            if steps > 1 and steps % 2 == 1:
                tr = max(sublane,
                         pl.cdiv(pl.cdiv(rows, steps + 1), sublane) * sublane)
                if pl.cdiv(rows, tr) % 2 == 0:
                    tile_rows = tr

        steps = pl.cdiv(rows, tile_rows)
        x2d = flat.reshape(rows, lanes)
        if steps >= 2:
            in_spec = pl.BlockSpec((tile_rows, lanes), lambda i: (i, 0),
                                   pipeline_mode=pl.Buffered(3))
        else:
            in_spec = pl.BlockSpec((tile_rows, lanes), lambda i: (i, 0))

        out = pl.pallas_call(
            kernel,
            out_shape=jax.ShapeDtypeStruct((rows, lanes), dtype),
            grid=(steps,),
            in_specs=[in_spec],
            out_specs=pl.BlockSpec((tile_rows, lanes), lambda i: (i, 0)),
            compiler_params=cparams,
            cost_estimate=cost,
            **extra,
        )(x2d)
        return out.reshape(orig_shape)

    # --- element count not a multiple of 128: 1-D blocks over the flat array.
    # Pallas masks the ragged final block itself -> no jnp.pad, no epilogue
    # slice, no extra full-tensor HBM passes, and aliasing stays available.
    align = sublane * _LANE
    block_elems = target_block_bytes // itemsize
    block_elems = max(align, (block_elems // align) * align)
    if block_elems >= total:
        block_elems = total            # single full-extent block (always legal)
    elif num_tc >= 2:
        steps = pl.cdiv(total, block_elems)
        if steps > 1 and steps % 2 == 1:
            be = max(align, pl.cdiv(pl.cdiv(total, steps + 1), align) * align)
            if pl.cdiv(total, be) % 2 == 0:
                block_elems = be

    steps = pl.cdiv(total, block_elems)
    if steps >= 2:
        in_spec = pl.BlockSpec((block_elems,), lambda i: (i,),
                               pipeline_mode=pl.Buffered(3))
    else:
        in_spec = pl.BlockSpec((block_elems,), lambda i: (i,))

    out = pl.pallas_call(
        kernel,
        out_shape=jax.ShapeDtypeStruct((total,), dtype),
        grid=(steps,),
        in_specs=[in_spec],
        out_specs=pl.BlockSpec((block_elems,), lambda i: (i,)),
        compiler_params=cparams,
        cost_estimate=cost,
        **extra,
    )(flat)
    return out.reshape(orig_shape)


if __name__ == "__main__":
    key = jax.random.PRNGKey(0)
    keys = jax.random.split(key, 6)

    # Module config: kernel_shape = [k, k, in_channels, out_channels]
    kernel_shape = [3, 3, 4, 8]
    gain = float(np.sqrt(2.0))
    fan_in = float(np.prod(kernel_shape[:-1]))
    scale = gain / math.sqrt(fan_in)

    def check(out, x):
        np.testing.assert_allclose(np.asarray(out),
                                   np.asarray(x, dtype=np.float32) * scale,
                                   rtol=1e-6, atol=1e-6)

    # 1) Small NCHW input (in_channels=4), forced through the Pallas 2-D path.
    x_small = jax.random.normal(keys[0], (2, 4, 16, 16), dtype=jnp.float32)
    out = jax.block_until_ready(
        weight_scaling(x_small, kernel_shape, gain, force_pallas=True))
    check(out, x_small)

    # 2) Default path on the small tensor (bypasses Pallas; plain fused mul).
    out2 = jax.block_until_ready(weight_scaling(x_small, kernel_shape, gain))
    check(out2, x_small)

    # 3) bf16 path (f32-accurate scale, then cast), forced through Pallas.
    x_bf16 = x_small.astype(jnp.bfloat16)
    out_bf16 = jax.block_until_ready(
        weight_scaling(x_bf16, kernel_shape, gain, force_pallas=True))
    ref_bf16 = (x_bf16.astype(jnp.float32) * jnp.float32(scale)).astype(jnp.bfloat16)
    np.testing.assert_allclose(np.asarray(out_bf16, dtype=np.float32),
                               np.asarray(ref_bf16, dtype=np.float32),
                               rtol=0, atol=0)

    # 4) Multi-step 2-D path (divisible rows): small block override -> grid=8.
    x_big = jax.random.normal(keys[1], (8, 32, 32, 32), dtype=jnp.float32)
    out3 = jax.block_until_ready(
        weight_scaling(x_big, kernel_shape, gain, force_pallas=True,
                       _block_bytes=64 << 10))
    check(out3, x_big)

    # 5) Ragged 2-D path: rows=20 with 8-row tiles -> last block masked.
    x_rag2d = jax.random.normal(keys[2], (20, 64, 64), dtype=jnp.float32)
    out4 = jax.block_until_ready(
        weight_scaling(x_rag2d, kernel_shape, gain, force_pallas=True,
                       _block_bytes=128 << 10))
    check(out4, x_rag2d)

    # 6) Element count not a multiple of 128, single full-extent 1-D block.
    x_odd = jax.random.normal(keys[3], (3, 5, 7, 11), dtype=jnp.float32)
    out5 = jax.block_until_ready(
        weight_scaling(x_odd, kernel_shape, gain, force_pallas=True))
    check(out5, x_odd)

    # 7) Element count not a multiple of 128, multi-block 1-D path with a
    #    ragged (masked) final block -- no jnp.pad / slice round trip.
    x_odd2 = jax.random.normal(keys[4], (2, 4, 33, 37), dtype=jnp.float32)
    out6 = jax.block_until_ready(
        weight_scaling(x_odd2, kernel_shape, gain, force_pallas=True,
                       _block_bytes=16 << 10))
    check(out6, x_odd2)

    # 8) Natural Pallas path (>= 4 MiB) with default chip-tuned block size.
    x_nat = jax.random.normal(keys[5], (64, 32, 32, 32), dtype=jnp.float32)
    out7 = jax.block_until_ready(weight_scaling(x_nat, kernel_shape, gain))
    check(out7, x_nat)

    print("KERNEL_OK")
</pallas_src>

<mosaic_0001>
module attributes {stable_mosaic.version = 11 : i64} {
  func.func @_lambda_(%arg0: i32, %arg1: memref<1x2048xf32, #tpu.memory_space<vmem>>, %arg2: memref<1x2048xf32, #tpu.memory_space<vmem>>) attributes {dimension_semantics = [#tpu.dimension_semantics<parallel>], iteration_bounds = array<i64: 1>, scalar_prefetch = 0 : i64, scratch_operands = 0 : i64, tpu.core_type = #tpu.core_type<tc>, window_params = [{transform_indices = @transform_0, window_bounds = array<i64: 1, 2048>}, {transform_indices = @transform_1, window_bounds = array<i64: 1, 2048>}]} {
    %c0 = arith.constant 0 : index
    %c0_0 = arith.constant 0 : index
    %0 = vector.load %arg1[%c0, %c0_0] : memref<1x2048xf32, #tpu.memory_space<vmem>>, vector<1x2048xf32>
    %cst = arith.constant 0.235702261 : f32
    %1 = vector.broadcast %cst : f32 to vector<1x2048xf32>
    %2 = arith.mulf %0, %1 : vector<1x2048xf32>
    %c0_1 = arith.constant 0 : index
    %c0_2 = arith.constant 0 : index
    %3 = vector.load %arg2[%c0_1, %c0_2] : memref<1x2048xf32, #tpu.memory_space<vmem>>, vector<1x2048xf32>
    tpu.vector_store %arg2[%c0_1, %c0_2], %2 {strides = array<i32>} : memref<1x2048xf32, #tpu.memory_space<vmem>>, vector<1x2048xf32>,
    return
  }
  func.func @transform_0(%arg0: i32) -> (i32, i32) {
    %c0_i32 = arith.constant 0 : i32
    %c0_i32_0 = arith.constant 0 : i32
    return %arg0, %c0_i32 : i32, i32
  }
  func.func @transform_1(%arg0: i32) -> (i32, i32) {
    %c0_i32 = arith.constant 0 : i32
    %c0_i32_0 = arith.constant 0 : i32
    return %arg0, %c0_i32 : i32, i32
  }
}

</mosaic_0001>

<bundles_post_ra>
// kernel: tpu_custom_call.1
= control target key start
LH: loop header
LB: loop body
LE: loop exit
PB: predicated region body
PF: predicated region fallthrough
CT: control target
= control target key end

     0   :  { %6 = vsyncpa [#allocation3], 0  ;;  %s118_s0 = inlined_call_operand.hbm [shape: f32[1,2048], index: 0, kind: input, shape index: {}]   ;;  %s119_s1 = inlined_call_operand.hbm [shape: f32[1,2048], index: 1, kind: output, shape index: {}]  }
   0x1   :  { %7 = vsyncpa [#allocation4], 0  ;;  %s13_s8 = sshll.u32 %s118_s0, 4  ;;  %s100_s9 = smov [#allocation2]   ;;  %s14_s8 = int_to_ptr.hbm [resolvable:$true] %s13_s8 }
   0x2   :  { %s15_s10 = sshll.u32 %s100_s9, 4  ;;  %s16_s10 = int_to_ptr.vmem [resolvable:$true] %s15_s10 }
   0x3   :  { %18 = dma.hbm_to_vmem [thread:$0]  %s14_s8, 256, %s16_s10, [#allocation3]  }
   0x4   :  { %96 = dma.done.wait [#allocation3], 256  }
   0x5   :  { %97 = vsyncadd [#allocation3], 4294967040  ;;  %s101_s11 = smov [#allocation5]   ;;  %s36_s15 = sshll.u32 %s119_s1, 4  ;;  %v23_v0 = vld [vmem:[#allocation2] sm:$0xff]  ;;  %v24_v1 = vld [vmem:[#allocation2 + $0x8] sm:$0xff]  ;;  %s37_s15 = int_to_ptr.hbm [resolvable:$true] %s36_s15 }
   0x6   :  { %s34_s12 = sshll.u32 %s101_s11, 4  ;;  %v25_v2 = vmul.f32 0.23570226, %v23_v0  ;;  %v26_v3 = vmul.f32 0.23570226, %v24_v1  ;;  %s35_s12 = int_to_ptr.vmem [resolvable:$true] %s34_s12 }
   0x8   :  { %27 = vst [vmem:[#allocation5] sm:$0xff] %v25_v2 }
   0x9   :  { %28 = vst [vmem:[#allocation5 + $0x8] sm:$0xff] %v26_v3 }
   0xa   :  { %39 = dma.vmem_to_hbm [thread:$0]  %s35_s12, 256, %s37_s15, [#allocation4]  }
   0xb   :  { %98 = dma.done.wait [#allocation4], 256  }
   0xc   :  { %99 = vsyncadd [#allocation4], 4294967040 }
   0xd   :  { %44 = vsyncpa [#allocation3], 1 }
   0xe   :  { %45 = vsyncpa [#allocation4], 1 }

</bundles_post_ra>
